<compile_context>
chip_gen: v7x
topology: tpu7x:2x2x1
jax: 0.10.0
libtpu: 0.0.40
codegen_flags: <defaults>
</compile_context>

<pallas_src>
import jax
import jax.numpy as jnp
from jax.experimental import pallas as pl
from jax.experimental.pallas import tpu as pltpu

LANES = 128
MAX_BLOCK_ROWS = 2048          # 2048 * 128 * 4B = 1 MiB per f32 input block
ACC_ROWS = 8                   # sublane-aligned rows per partition in output


def _mse_partial_kernel(o_ref, t_ref, out_ref, *, block_rows, steps_per_part,
                        valid_rows):
    """Accumulate sum((o - t)^2) of this partition's blocks into out_ref[0,:]."""
    c = pl.program_id(0)       # partition ("parallel") axis
    i = pl.program_id(1)       # reduction ("arbitrary") axis

    @pl.when(i == 0)
    def _():
        out_ref[...] = jnp.zeros_like(out_ref)

    # Nominal (unclamped) global row offset of this block.  Rows >= valid_rows
    # are masked out: this covers both the ragged tail of the last real block
    # and any fully out-of-range (clamped, duplicated) block of the final
    # partition, so their contribution is exactly zero.
    row_start = (c * steps_per_part + i) * block_rows
    row_ids = row_start + jax.lax.broadcasted_iota(jnp.int32, (block_rows, 1), 0)
    mask = row_ids < valid_rows

    d = o_ref[...].astype(jnp.float32) - t_ref[...].astype(jnp.float32)
    dd = jnp.where(mask, d * d, 0.0)

    # One sublane (XLU) reduce per ~1 MiB block; accumulate into the resident
    # output block.  Cross-lane reduction happens exactly once, in the wrapper.
    out_ref[0:1, :] += jnp.sum(dd, axis=0, keepdims=True)


def base_loss_mse(output: jax.Array, target: jax.Array) -> jax.Array:
    """BaseLoss(nn.MSELoss) forward: mean((output - target)**2), shape (1,)."""
    assert output.shape == target.shape
    n = output.size

    # Layout-preserving reshapes only (no dtype change, no full-array pad).
    flat_o = output.reshape(-1)
    flat_t = target.reshape(-1)
    rem = n % LANES
    if rem:
        # Minimal (<128 elem) lane pad; zeros contribute nothing to the sum.
        # TODO(synk): could also be removed with in-kernel lane masking.
        flat_o = jnp.pad(flat_o, (0, LANES - rem))
        flat_t = jnp.pad(flat_t, (0, LANES - rem))
    rows = flat_o.size // LANES
    o2d = flat_o.reshape(rows, LANES)
    t2d = flat_t.reshape(rows, LANES)

    # Block sizing: as large as useful (<= 1 MiB f32 per input block), rounded
    # to the 8-sublane quantum, never (much) larger than the array itself.
    block_rows = min(MAX_BLOCK_ROWS, ((rows + 7) // 8) * 8)
    num_blocks = pl.cdiv(rows, block_rows)
    # Split the reduction across 2 partitions when possible so the v7x
    # megacore can stream from HBM with both TensorCores (free on v5e/v6e).
    num_parts = 2 if num_blocks >= 2 else 1
    steps_per_part = pl.cdiv(num_blocks, num_parts)

    def in_map(c, i):
        # Clamp so an overhanging final partition never requests a block past
        # the array; its contribution is masked to zero inside the kernel.
        return (jnp.minimum(c * steps_per_part + i, num_blocks - 1), 0)

    kernel = lambda o, t, out: _mse_partial_kernel(
        o, t, out, block_rows=block_rows, steps_per_part=steps_per_part,
        valid_rows=rows)

    partials = pl.pallas_call(
        kernel,
        out_shape=jax.ShapeDtypeStruct((num_parts * ACC_ROWS, LANES),
                                       jnp.float32),
        grid_spec=pltpu.PrefetchScalarGridSpec(
            num_scalar_prefetch=0,
            grid=(num_parts, steps_per_part),
            in_specs=[
                pl.BlockSpec((block_rows, LANES), in_map),
                pl.BlockSpec((block_rows, LANES), in_map),
            ],
            out_specs=pl.BlockSpec((ACC_ROWS, LANES), lambda c, i: (c, 0)),
        ),
        compiler_params=pltpu.CompilerParams(
            dimension_semantics=("parallel", "arbitrary")),
    )(o2d, t2d)

    # Single cheap cross-lane reduce over (num_parts*8, 128) partials + 1/N.
    return (jnp.sum(partials) / jnp.float32(n)).reshape((1,))


if __name__ == "__main__":
    key = jax.random.PRNGKey(0)
    k1, k2 = jax.random.split(key)
    # Shapes consistent with "(N, ...)" network output, NCHW-style.
    output = jax.random.normal(k1, (2, 4, 16, 16), dtype=jnp.float32)
    target = jax.random.normal(k2, (2, 4, 16, 16), dtype=jnp.float32)

    loss = base_loss_mse(output, target)
    jax.block_until_ready(loss)

    # Sanity check against plain-JAX reference (same semantics as nn.MSELoss).
    ref = jnp.mean((output - target) ** 2).reshape((1,))
    assert loss.shape == (1,)
    assert jnp.allclose(loss, ref, rtol=1e-5, atol=1e-6), (loss, ref)

    print("KERNEL_OK")
</pallas_src>

<mosaic_0001>
module attributes {stable_mosaic.version = 11 : i64} {
  func.func @_lambda_(%arg0: i32, %arg1: i32, %arg2: memref<16x128xf32, #tpu.memory_space<vmem>>, %arg3: memref<16x128xf32, #tpu.memory_space<vmem>>, %arg4: memref<8x128xf32, #tpu.memory_space<vmem>>) attributes {dimension_semantics = [#tpu.dimension_semantics<parallel>, #tpu.dimension_semantics<arbitrary>], iteration_bounds = array<i64: 1, 1>, scalar_prefetch = 0 : i64, scratch_operands = 0 : i64, tpu.core_type = #tpu.core_type<tc>, window_params = [{transform_indices = @transform_0, window_bounds = array<i64: 16, 128>}, {transform_indices = @transform_1, window_bounds = array<i64: 16, 128>}, {transform_indices = @transform_2, window_bounds = array<i64: 8, 128>}]} {
    %c0_i32 = arith.constant 0 : i32
    %0 = arith.cmpi eq, %arg1, %c0_i32 : i32
    %1 = arith.extui %0 : i1 to i32
    %c0_i32_0 = arith.constant 0 : i32
    %2 = arith.cmpi ne, %1, %c0_i32_0 : i32
    scf.if %2 {
      %cst_10 = arith.constant 0.000000e+00 : f32
      %24 = vector.broadcast %cst_10 : f32 to vector<8x128xf32>
      %c0_11 = arith.constant 0 : index
      %c0_12 = arith.constant 0 : index
      %25 = vector.load %arg4[%c0_11, %c0_12] : memref<8x128xf32, #tpu.memory_space<vmem>>, vector<8x128xf32>
      tpu.vector_store %arg4[%c0_11, %c0_12], %24 {strides = array<i32>} : memref<8x128xf32, #tpu.memory_space<vmem>>, vector<8x128xf32>,
    } else {
    }
    %c1_i32 = arith.constant 1 : i32
    %3 = arith.muli %arg0, %c1_i32 : i32
    %4 = arith.addi %3, %arg1 : i32
    %c16_i32 = arith.constant 16 : i32
    %5 = arith.muli %4, %c16_i32 : i32
    %6 = tpu.iota {dimensions = array<i32: 0>} : vector<16x1xi32>
    %7 = vector.broadcast %5 : i32 to vector<16x1xi32>
    %8 = arith.addi %7, %6 : vector<16x1xi32>
    %c16_i32_1 = arith.constant 16 : i32
    %9 = vector.broadcast %c16_i32_1 : i32 to vector<16x1xi32>
    %10 = arith.cmpi slt, %8, %9 : vector<16x1xi32>
    %c0 = arith.constant 0 : index
    %c0_2 = arith.constant 0 : index
    %11 = vector.load %arg2[%c0, %c0_2] : memref<16x128xf32, #tpu.memory_space<vmem>>, vector<16x128xf32>
    %c0_3 = arith.constant 0 : index
    %c0_4 = arith.constant 0 : index
    %12 = vector.load %arg3[%c0_3, %c0_4] : memref<16x128xf32, #tpu.memory_space<vmem>>, vector<16x128xf32>
    %13 = arith.subf %11, %12 : vector<16x128xf32>
    %14 = arith.mulf %13, %13 : vector<16x128xf32>
    %cst = arith.constant 0.000000e+00 : f32
    %15 = vector.shape_cast %10 : vector<16x1xi1> to vector<16x1xi1>
    %16 = vector.broadcast %15 : vector<16x1xi1> to vector<16x128xi1>
    %17 = vector.broadcast %cst : f32 to vector<16x128xf32>
    %18 = arith.select %16, %14, %17 : vector<16x128xi1>, vector<16x128xf32>
    %c0_5 = arith.constant 0 : index
    %c0_6 = arith.constant 0 : index
    %19 = vector.load %arg4[%c0_5, %c0_6] : memref<8x128xf32, #tpu.memory_space<vmem>>, vector<1x128xf32>
    %cst_7 = arith.constant dense<0.000000e+00> : vector<128xf32>
    %20 = vector.multi_reduction <add>, %18, %cst_7 [0] : vector<16x128xf32> to vector<128xf32>
    %21 = vector.shape_cast %20 : vector<128xf32> to vector<1x128xf32>
    %22 = arith.addf %19, %21 : vector<1x128xf32>
    %c0_8 = arith.constant 0 : index
    %c0_9 = arith.constant 0 : index
    %23 = vector.load %arg4[%c0_8, %c0_9] : memref<8x128xf32, #tpu.memory_space<vmem>>, vector<1x128xf32>
    tpu.vector_store %arg4[%c0_8, %c0_9], %22 {strides = array<i32>} : memref<8x128xf32, #tpu.memory_space<vmem>>, vector<1x128xf32>,
    return
  }
  func.func @transform_0(%arg0: i32, %arg1: i32) -> (i32, i32) {
    %c1_i32 = arith.constant 1 : i32
    %0 = arith.muli %arg0, %c1_i32 : i32
    %1 = arith.addi %0, %arg1 : i32
    %c0_i32 = arith.constant 0 : i32
    %2 = arith.minsi %1, %c0_i32 : i32
    %c0_i32_0 = arith.constant 0 : i32
    %c0_i32_1 = arith.constant 0 : i32
    return %2, %c0_i32_0 : i32, i32
  }
  func.func @transform_1(%arg0: i32, %arg1: i32) -> (i32, i32) {
    %c1_i32 = arith.constant 1 : i32
    %0 = arith.muli %arg0, %c1_i32 : i32
    %1 = arith.addi %0, %arg1 : i32
    %c0_i32 = arith.constant 0 : i32
    %2 = arith.minsi %1, %c0_i32 : i32
    %c0_i32_0 = arith.constant 0 : i32
    %c0_i32_1 = arith.constant 0 : i32
    return %2, %c0_i32_0 : i32, i32
  }
  func.func @transform_2(%arg0: i32, %arg1: i32) -> (i32, i32) {
    %c0_i32 = arith.constant 0 : i32
    %c0_i32_0 = arith.constant 0 : i32
    return %arg0, %c0_i32 : i32, i32
  }
}

</mosaic_0001>

<bundles_post_ra>
// kernel: tpu_custom_call.1
= control target key start
LH: loop header
LB: loop body
LE: loop exit
PB: predicated region body
PF: predicated region fallthrough
CT: control target
= control target key end

     0   :  { %7 = vsyncpa [#allocation3], 0  ;;  %s254_s0 = inlined_call_operand.hbm [shape: f32[16,128], index: 0, kind: input, shape index: {}]   ;;  %s255_s1 = inlined_call_operand.hbm [shape: f32[16,128], index: 1, kind: input, shape index: {}]   ;;  %s256_s2 = inlined_call_operand.hbm [shape: f32[8,128], index: 2, kind: output, shape index: {}]  }
   0x1   :  { %8 = vsyncpa [#allocation6], 0 }
   0x2   :  { %9 = vsyncpa [#allocation4], 0  ;;  %s197_s9 = smov [#allocation2]   ;;  %s125_s13 = scalar_lea.hbm %s254_s0, 256 }
   0x3   :  { %s21_s10 = sshll.u32 %s197_s9, 4  ;;  %p126_p0 = scmp.ne.s32.totalorder %s254_s0, %s125_s13  ;;  %s22_s10 = int_to_ptr.vmem [resolvable:$true] %s21_s10 }
   0x4   :  { %p129_p1 = scmp.lt.u32.totalorder %s125_s13, %s254_s0 }
   0x6   :  { %p131_p2 = pnand %p129_p1, %p126_p0 }
   0x8   :  { %134 = shalt.err (!%p131_p2)
}
   0x9   :  { %s135_s18 = scalar_lea.vmem %s22_s10, 256  ;;  %p140_p4 = scmp.lt.s32.totalorder %s22_s10, %s22_s10 }
   0xa   :  { %p136_p3 = scmp.ne.s32.totalorder %s22_s10, %s135_s18  ;;  %p141_p5 = scmp.lt.s32.totalorder %s135_s18, %s135_s18 }
   0xc   :  { %p142_p6 = por %p141_p5, %p140_p4 }
   0xe   :  { %p143_p7 = pnand %p142_p6, %p136_p3 }
  0x10   :  { %146 = shalt.err (!%p143_p7)
}
  0x11   :  { %s198_s19 = smov 128   ;;  %s199_s20 = smov 8  }
  0x12   :  { %27 = dma.hbm_to_vmem [thread:$0]  %s254_s0, 256, %s22_s10, [#allocation3], %s198_s19, %s198_s19, %s199_s20  }
  0x13   :  { %s200_s23 = smov [#allocation5]   ;;  %s147_s27 = scalar_lea.hbm %s255_s1, 256 }
  0x14   :  { %s39_s24 = sshll.u32 %s200_s23, 4  ;;  %p148_p8 = scmp.ne.s32.totalorder %s255_s1, %s147_s27  ;;  %s40_s24 = int_to_ptr.vmem [resolvable:$true] %s39_s24 }
  0x15   :  { %p151_p9 = scmp.lt.u32.totalorder %s147_s27, %s255_s1 }
  0x17   :  { %p153_p10 = pnand %p151_p9, %p148_p8 }
  0x19   :  { %156 = shalt.err (!%p153_p10)
}
  0x1a   :  { %s157_s4 = scalar_lea.vmem %s40_s24, 256  ;;  %p162_p12 = scmp.lt.s32.totalorder %s40_s24, %s40_s24 }
  0x1b   :  { %p158_p11 = scmp.ne.s32.totalorder %s40_s24, %s157_s4  ;;  %p163_p13 = scmp.lt.s32.totalorder %s157_s4, %s157_s4 }
  0x1d   :  { %p164_p0 = por %p163_p13, %p162_p12 }
  0x1f   :  { %p165_p1 = pnand %p164_p0, %p158_p11 }
  0x21   :  { %168 = shalt.err (!%p165_p1)
}
  0x22   :  { %45 = dma.hbm_to_vmem [thread:$0]  %s255_s1, 256, %s40_s24, [#allocation6], %s198_s19, %s198_s19, %s199_s20  }
  0x23   :  { %191 = dma.done.wait [#allocation3], 256  }
  0x24   :  { %192 = vsyncadd [#allocation3], 4294967040 }
  0x25   :  { %193 = dma.done.wait [#allocation6], 256  }
  0x26   :  { %194 = vsyncadd [#allocation6], 4294967040  ;;  %v201_v0 = vmov 0.0   ;;  %v75_v1 = vld [vmem:[#allocation2] sm:$0xff]  ;;  %v76_v2 = vld [vmem:[#allocation2 + $0x8] sm:$0xff]  ;;  %s202_s1 = smov [#allocation7]  }
  0x27   :  { %64 = vst [vmem:[#allocation7] sm:$0xff] %v201_v0  ;;  %v77_v3 = vld [vmem:[#allocation5] sm:$0xff]  ;;  %v78_v4 = vld [vmem:[#allocation5 + $0x8] sm:$0xff]  ;;  %s105_s6 = sshll.u32 %s202_s1, 4  ;;  %s106_s6 = int_to_ptr.vmem [resolvable:$true] %s105_s6 }
  0x28   :  { %v79_v5 = vsub.f32 %v75_v1, %v77_v3  ;;  %v80_v6 = vsub.f32 %v76_v2, %v78_v4  ;;  %s169_s7 = scalar_lea.vmem %s106_s6, 128  ;;  %p174_p3 = scmp.lt.s32.totalorder %s106_s6, %s106_s6 }
  0x29   :  { %p170_p2 = scmp.ne.s32.totalorder %s106_s6, %s169_s7  ;;  %p175_p4 = scmp.lt.s32.totalorder %s169_s7, %s169_s7 }
  0x2a   :  { %v81_v7 = vmul.f32 %v79_v5, %v79_v5  ;;  %v82_v8 = vmul.f32 %v80_v6, %v80_v6 }
  0x2b   :  { %p176_p5 = por %p175_p4, %p174_p3 }
  0x2c   :  { %v90_v9 = vadd.f32 %v82_v8, %v81_v7 }
  0x2d   :  { %p177_p6 = pnand %p176_p5, %p170_p2 }
  0x2e   :  { %v91_v10 = vrot.slane %v90_v9, 4  ;;  %v89_v15 = vld [vmem:[#allocation7] sm:$0x1] }
  0x30   :  { %v92_v11 = vadd.f32 %v91_v10, %v90_v9 }
  0x32   :  { %v93_v12 = vrot.slane %v92_v11, 2 }
  0x34   :  { %v94_v13 = vadd.f32 %v93_v12, %v92_v11 }
  0x36   :  { %v95_v14 = vrot.slane %v94_v13, 1 }
  0x38   :  { %v96_v16 = vadd.f32 %v95_v14, %v94_v13 }
  0x3a   :  { %v97_v17 = vadd.f32 %v96_v16, %v89_v15 }
  0x3c   :  { %98 = vst [vmem:[#allocation7] sm:$0x1] %v97_v17 }
  0x3d   :  { %180 = shalt.err (!%p177_p6)
}
  0x3e   :  { %s181_s10 = scalar_lea.hbm %s256_s2, 128 }
  0x3f   :  { %p182_p7 = scmp.ne.s32.totalorder %s256_s2, %s181_s10  ;;  %p185_p8 = scmp.lt.u32.totalorder %s181_s10, %s256_s2 }
  0x41   :  { %p187_p9 = pnand %p185_p8, %p182_p7 }
  0x43   :  { %190 = shalt.err (!%p187_p9)
}
  0x44   :  { %108 = dma.vmem_to_hbm [thread:$0]  %s106_s6, 128, %s256_s2, [#allocation4]  }
  0x45   :  { %195 = dma.done.wait [#allocation4], 128  }
  0x46   :  { %196 = vsyncadd [#allocation4], 4294967168 }
  0x47   :  { %112 = vsyncpa [#allocation3], 1 }
  0x48   :  { %113 = vsyncpa [#allocation6], 1 }
  0x49   :  { %114 = vsyncpa [#allocation4], 1 }

</bundles_post_ra>
